<compile_context>
chip_gen: v6e
topology: v6e:2x2x1
jax: 0.10.0
libtpu: 0.0.40
codegen_flags: <defaults>
</compile_context>

<pallas_src>
import jax
import jax.numpy as jnp
from jax.experimental import pallas as pl
from jax.experimental.pallas import tpu as pltpu


def _rope_kernel(q_ref, k_ref, cos_ref, sin_ref, qo_ref, ko_ref):
    # cos/sin are half-width tables: shape (S, D//2), float32.
    c = cos_ref[...]
    s = sin_ref[...]
    half = c.shape[-1]

    def apply(x_ref, o_ref):
        x = x_ref[...].astype(jnp.float32)      # (TH, S, D)
        x1 = x[..., :half]                      # (TH, S, D//2)
        x2 = x[..., half:]                      # (TH, S, D//2)
        # out = x * cos + rotate_half(x) * sin, rotate_half(x) = cat(-x2, x1)
        o = jnp.concatenate([x1 * c - x2 * s, x2 * c + x1 * s], axis=-1)
        o_ref[...] = o.astype(o_ref.dtype)

    apply(q_ref, qo_ref)
    apply(k_ref, ko_ref)


def _choose_heads_per_block(BH, S, D, itemsize, target_slab_bytes=2 << 20):
    """Pick how many heads to fuse per grid step (must divide B*H)."""
    per_head = S * D * itemsize
    th = int(max(1, min(BH, target_slab_bytes // per_head)))
    while BH % th:
        th -= 1
    # Keep >= 2 grid steps so both v7x TensorCores get work.
    if th == BH and BH >= 2:
        th = BH // 2
        while BH % th:
            th -= 1
    return int(th)


def rotary_embedding(q: jax.Array, k: jax.Array):
    """Applies rotary position embeddings to q and k.

    q, k: (B, H, S, D).  Returns (q_rot, k_rot) with the same shapes/dtypes.
    """
    B, H, S, D = q.shape
    assert k.shape == (B, H, S, D), "q and k must share (B, H, S, D)"
    assert D % 2 == 0
    half = D // 2

    # --- cos/sin table construction (cache setup, plain JAX, tiny) ---------
    # Matches PyTorch: inv_freq = 1/10000**(arange(0, D, 2)/D); emb = cat(f, f)
    # so cos[:, :half] == cos[:, half:] -> only half-width tables are needed.
    inv_freq = 1.0 / (10000.0 ** (jnp.arange(0, D, 2, dtype=jnp.float32) / D))
    t = jnp.arange(S, dtype=jnp.float32)
    freqs = jnp.outer(t, inv_freq)                  # (S, D/2)
    cos_h = jnp.cos(freqs).astype(jnp.float32)
    sin_h = jnp.sin(freqs).astype(jnp.float32)

    # --- hot path in Pallas -------------------------------------------------
    BH = B * H
    qf = q.reshape(BH, S, D)
    kf = k.reshape(BH, S, D)

    itemsize = q.dtype.itemsize
    th = _choose_heads_per_block(BH, S, D, itemsize)
    grid = (BH // th,)

    slab_spec = pl.BlockSpec((th, S, D), lambda i: (i, 0, 0))
    table_spec = pl.BlockSpec((S, half), lambda i: (0, 0))

    # VMEM budget: 4 streams (q, k, qo, ko) double-buffered + resident tables,
    # with headroom; stay below v7x's 64 MiB physical VMEM.
    slab_bytes = th * S * D * itemsize
    table_bytes = 2 * S * half * 4
    vmem_limit = int(2 * (8 * slab_bytes + 2 * table_bytes)) + (4 << 20)
    vmem_limit = max(vmem_limit, 32 << 20)
    vmem_limit = min(vmem_limit, 48 << 20)
    # TODO(synk): for very long sequences (th == 1 slab > ~6 MiB) also tile S;
    # not needed for ProSST head shapes.

    q_out, k_out = pl.pallas_call(
        _rope_kernel,
        out_shape=(
            jax.ShapeDtypeStruct((BH, S, D), q.dtype),
            jax.ShapeDtypeStruct((BH, S, D), k.dtype),
        ),
        grid_spec=pltpu.PrefetchScalarGridSpec(
            num_scalar_prefetch=0,
            grid=grid,
            in_specs=[slab_spec, slab_spec, table_spec, table_spec],
            out_specs=[slab_spec, slab_spec],
        ),
        compiler_params=pltpu.CompilerParams(
            dimension_semantics=("parallel",),
            vmem_limit_bytes=vmem_limit,
        ),
    )(qf, kf, cos_h, sin_h)

    return q_out.reshape(B, H, S, D), k_out.reshape(B, H, S, D)


def _reference(q, k):
    """Pure-JAX reference mirroring the PyTorch module."""
    B, H, S, D = q.shape
    inv_freq = 1.0 / (10000.0 ** (jnp.arange(0, D, 2, dtype=jnp.float32) / D))
    t = jnp.arange(S, dtype=jnp.float32)
    freqs = jnp.outer(t, inv_freq)
    emb = jnp.concatenate([freqs, freqs], axis=-1)
    cos = jnp.cos(emb)[None, None, :, :]
    sin = jnp.sin(emb)[None, None, :, :]

    def rotate_half(x):
        x1, x2 = jnp.split(x, 2, axis=-1)
        return jnp.concatenate([-x2, x1], axis=-1)

    def apply(x):
        return x * cos + rotate_half(x) * sin

    return apply(q), apply(k)


if __name__ == "__main__":
    key = jax.random.PRNGKey(0)
    kq, kk = jax.random.split(key)
    B, H, S, D = 2, 4, 8, 32
    q = jax.random.normal(kq, (B, H, S, D), dtype=jnp.float32)
    k = jax.random.normal(kk, (B, H, S, D), dtype=jnp.float32)

    q_rot, k_rot = rotary_embedding(q, k)
    jax.block_until_ready((q_rot, k_rot))

    q_ref, k_ref = _reference(q, k)
    assert jnp.allclose(q_rot, q_ref, atol=1e-5, rtol=1e-5)
    assert jnp.allclose(k_rot, k_ref, atol=1e-5, rtol=1e-5)

    print("KERNEL_OK")
</pallas_src>

<mosaic_0001>
module attributes {stable_mosaic.version = 11 : i64} {
  func.func @_rope_kernel(%arg0: i32, %arg1: memref<4x8x32xf32, #tpu.memory_space<vmem>>, %arg2: memref<4x8x32xf32, #tpu.memory_space<vmem>>, %arg3: memref<8x16xf32, #tpu.memory_space<vmem>>, %arg4: memref<8x16xf32, #tpu.memory_space<vmem>>, %arg5: memref<4x8x32xf32, #tpu.memory_space<vmem>>, %arg6: memref<4x8x32xf32, #tpu.memory_space<vmem>>) attributes {dimension_semantics = [#tpu.dimension_semantics<parallel>], iteration_bounds = array<i64: 2>, scalar_prefetch = 0 : i64, scratch_operands = 0 : i64, tpu.core_type = #tpu.core_type<tc>, window_params = [{transform_indices = @transform_0, window_bounds = array<i64: 4, 8, 32>}, {transform_indices = @transform_1, window_bounds = array<i64: 4, 8, 32>}, {pipeline_mode = #tpu.pipeline_mode<synchronous>, transform_indices = @transform_2, window_bounds = array<i64: 8, 16>}, {pipeline_mode = #tpu.pipeline_mode<synchronous>, transform_indices = @transform_3, window_bounds = array<i64: 8, 16>}, {transform_indices = @transform_4, window_bounds = array<i64: 4, 8, 32>}, {transform_indices = @transform_5, window_bounds = array<i64: 4, 8, 32>}]} {
    %c0 = arith.constant 0 : index
    %c0_0 = arith.constant 0 : index
    %0 = vector.load %arg3[%c0, %c0_0] : memref<8x16xf32, #tpu.memory_space<vmem>>, vector<8x16xf32>
    %c0_1 = arith.constant 0 : index
    %c0_2 = arith.constant 0 : index
    %1 = vector.load %arg4[%c0_1, %c0_2] : memref<8x16xf32, #tpu.memory_space<vmem>>, vector<8x16xf32>
    %c0_3 = arith.constant 0 : index
    %c0_4 = arith.constant 0 : index
    %c0_5 = arith.constant 0 : index
    %2 = vector.load %arg1[%c0_3, %c0_4, %c0_5] : memref<4x8x32xf32, #tpu.memory_space<vmem>>, vector<4x8x32xf32>
    %3 = vector.extract_strided_slice %2 {offsets = [0, 0, 0], sizes = [4, 8, 16], strides = [1, 1, 1]} : vector<4x8x32xf32> to vector<4x8x16xf32>
    %4 = vector.extract_strided_slice %2 {offsets = [0, 0, 16], sizes = [4, 8, 16], strides = [1, 1, 1]} : vector<4x8x32xf32> to vector<4x8x16xf32>
    %5 = vector.shape_cast %0 : vector<8x16xf32> to vector<1x8x16xf32>
    %6 = vector.broadcast %5 : vector<1x8x16xf32> to vector<4x8x16xf32>
    %7 = arith.mulf %3, %6 : vector<4x8x16xf32>
    %8 = vector.shape_cast %1 : vector<8x16xf32> to vector<1x8x16xf32>
    %9 = vector.broadcast %8 : vector<1x8x16xf32> to vector<4x8x16xf32>
    %10 = arith.mulf %4, %9 : vector<4x8x16xf32>
    %11 = arith.subf %7, %10 : vector<4x8x16xf32>
    %12 = vector.shape_cast %0 : vector<8x16xf32> to vector<1x8x16xf32>
    %13 = vector.broadcast %12 : vector<1x8x16xf32> to vector<4x8x16xf32>
    %14 = arith.mulf %4, %13 : vector<4x8x16xf32>
    %15 = vector.shape_cast %1 : vector<8x16xf32> to vector<1x8x16xf32>
    %16 = vector.broadcast %15 : vector<1x8x16xf32> to vector<4x8x16xf32>
    %17 = arith.mulf %3, %16 : vector<4x8x16xf32>
    %18 = arith.addf %14, %17 : vector<4x8x16xf32>
    %19 = tpu.concatenate %11, %18 in 2 : vector<4x8x16xf32>, vector<4x8x16xf32> -> vector<4x8x32xf32>
    %c0_6 = arith.constant 0 : index
    %c0_7 = arith.constant 0 : index
    %c0_8 = arith.constant 0 : index
    %20 = vector.load %arg5[%c0_6, %c0_7, %c0_8] : memref<4x8x32xf32, #tpu.memory_space<vmem>>, vector<4x8x32xf32>
    tpu.vector_store %arg5[%c0_6, %c0_7, %c0_8], %19 {strides = array<i32>} : memref<4x8x32xf32, #tpu.memory_space<vmem>>, vector<4x8x32xf32>,
    %c0_9 = arith.constant 0 : index
    %c0_10 = arith.constant 0 : index
    %c0_11 = arith.constant 0 : index
    %21 = vector.load %arg2[%c0_9, %c0_10, %c0_11] : memref<4x8x32xf32, #tpu.memory_space<vmem>>, vector<4x8x32xf32>
    %22 = vector.extract_strided_slice %21 {offsets = [0, 0, 0], sizes = [4, 8, 16], strides = [1, 1, 1]} : vector<4x8x32xf32> to vector<4x8x16xf32>
    %23 = vector.extract_strided_slice %21 {offsets = [0, 0, 16], sizes = [4, 8, 16], strides = [1, 1, 1]} : vector<4x8x32xf32> to vector<4x8x16xf32>
    %24 = vector.shape_cast %0 : vector<8x16xf32> to vector<1x8x16xf32>
    %25 = vector.broadcast %24 : vector<1x8x16xf32> to vector<4x8x16xf32>
    %26 = arith.mulf %22, %25 : vector<4x8x16xf32>
    %27 = vector.shape_cast %1 : vector<8x16xf32> to vector<1x8x16xf32>
    %28 = vector.broadcast %27 : vector<1x8x16xf32> to vector<4x8x16xf32>
    %29 = arith.mulf %23, %28 : vector<4x8x16xf32>
    %30 = arith.subf %26, %29 : vector<4x8x16xf32>
    %31 = vector.shape_cast %0 : vector<8x16xf32> to vector<1x8x16xf32>
    %32 = vector.broadcast %31 : vector<1x8x16xf32> to vector<4x8x16xf32>
    %33 = arith.mulf %23, %32 : vector<4x8x16xf32>
    %34 = vector.shape_cast %1 : vector<8x16xf32> to vector<1x8x16xf32>
    %35 = vector.broadcast %34 : vector<1x8x16xf32> to vector<4x8x16xf32>
    %36 = arith.mulf %22, %35 : vector<4x8x16xf32>
    %37 = arith.addf %33, %36 : vector<4x8x16xf32>
    %38 = tpu.concatenate %30, %37 in 2 : vector<4x8x16xf32>, vector<4x8x16xf32> -> vector<4x8x32xf32>
    %c0_12 = arith.constant 0 : index
    %c0_13 = arith.constant 0 : index
    %c0_14 = arith.constant 0 : index
    %39 = vector.load %arg6[%c0_12, %c0_13, %c0_14] : memref<4x8x32xf32, #tpu.memory_space<vmem>>, vector<4x8x32xf32>
    tpu.vector_store %arg6[%c0_12, %c0_13, %c0_14], %38 {strides = array<i32>} : memref<4x8x32xf32, #tpu.memory_space<vmem>>, vector<4x8x32xf32>,
    return
  }
  func.func @transform_0(%arg0: i32) -> (i32, i32, i32) {
    %c0_i32 = arith.constant 0 : i32
    %c0_i32_0 = arith.constant 0 : i32
    %c0_i32_1 = arith.constant 0 : i32
    return %arg0, %c0_i32, %c0_i32_0 : i32, i32, i32
  }
  func.func @transform_1(%arg0: i32) -> (i32, i32, i32) {
    %c0_i32 = arith.constant 0 : i32
    %c0_i32_0 = arith.constant 0 : i32
    %c0_i32_1 = arith.constant 0 : i32
    return %arg0, %c0_i32, %c0_i32_0 : i32, i32, i32
  }
  func.func @transform_2(%arg0: i32) -> (i32, i32) {
    %c0_i32 = arith.constant 0 : i32
    %c0_i32_0 = arith.constant 0 : i32
    %c0_i32_1 = arith.constant 0 : i32
    return %c0_i32, %c0_i32_0 : i32, i32
  }
  func.func @transform_3(%arg0: i32) -> (i32, i32) {
    %c0_i32 = arith.constant 0 : i32
    %c0_i32_0 = arith.constant 0 : i32
    %c0_i32_1 = arith.constant 0 : i32
    return %c0_i32, %c0_i32_0 : i32, i32
  }
  func.func @transform_4(%arg0: i32) -> (i32, i32, i32) {
    %c0_i32 = arith.constant 0 : i32
    %c0_i32_0 = arith.constant 0 : i32
    %c0_i32_1 = arith.constant 0 : i32
    return %arg0, %c0_i32, %c0_i32_0 : i32, i32, i32
  }
  func.func @transform_5(%arg0: i32) -> (i32, i32, i32) {
    %c0_i32 = arith.constant 0 : i32
    %c0_i32_0 = arith.constant 0 : i32
    %c0_i32_1 = arith.constant 0 : i32
    return %arg0, %c0_i32, %c0_i32_0 : i32, i32, i32
  }
}

</mosaic_0001>

<bundles_post_ra>
// kernel: tpu_custom_call.1
= control target key start
LH: loop header
LB: loop body
LE: loop exit
PB: predicated region body
PF: predicated region fallthrough
CT: control target
= control target key end

     0   :  { %s1409_s0 = inlined_call_operand.hbm [shape: f32[8,8,32], index: 0, kind: input, shape index: {}]   ;;  %s1410_s1 = inlined_call_operand.hbm [shape: f32[8,8,32], index: 1, kind: input, shape index: {}]   ;;  %s1411_s2 = inlined_call_operand.hbm [shape: f32[8,16], index: 2, kind: input, shape index: {}]   ;;  %s1412_s3 = inlined_call_operand.hbm [shape: f32[8,16], index: 3, kind: input, shape index: {}]   ;;  %s1413_s4 = inlined_call_operand.hbm [shape: f32[8,8,32], index: 4, kind: output, shape index: {0}]   ;;  %s1414_s5 = inlined_call_operand.hbm [shape: f32[8,8,32], index: 5, kind: output, shape index: {1}]  }
   0x1   :  { %1418 = sst [smem:[#allocation19_spill]] %s1409_s0 }
   0x2   :  { %1419 = sst [smem:[#allocation20_spill]] %s1411_s2 }
   0x3   :  { %11 = vsyncpa [#allocation3], 0 }
   0x4   :  { %13 = vsyncpa [#allocation3 + $0x1], 0 }
   0x5   :  { %14 = vsyncpa [#allocation6], 0 }
   0x6   :  { %16 = vsyncpa [#allocation6 + $0x1], 0 }
   0x7   :  { %17 = vsyncpa [#allocation9], 0 }
   0x8   :  { %18 = vsyncpa [#allocation4], 0 }
   0x9   :  { %20 = vsyncpa [#allocation4 + $0x1], 0 }
   0xa   :  { %21 = vsyncpa [#allocation12], 0 }
   0xb   :  { %23 = vsyncpa [#allocation12 + $0x1], 0  ;;  %s1024_s18 = smov 0   ;;  %s1026_s19 = smov 0  }
   0xc   :  { %s1028_s20 = smov 0   ;;  %s1030_s21 = smov 0  }
   0xd LB: > { %s1045_s22 = sadd.s32 4294967295, %s980_s21   ;;  %s653_s23 = sadd.s32 4294967294, %s980_s21   ;;  %s980_s21 = sphi %s1030_s21, %s1441_s21   ;;  %s976_s20 = sphi %s1028_s20, %s1440_s20   ;;  %s972_s19 = sphi %s1026_s19, %s1439_s19   ;;  %s968_s18 = sphi %s1024_s18, %s1438_s18  }
   0xe   : > { %s1049_s24 = sadd.s32 1, %s980_s21   ;;  %s36_s25 = sadd.s32 1, %s976_s20 }
   0xf   : > { %s33_s26 = ssub.s32 %s980_s21, %s1049_s24  ;;  %p43_p0 = scmp.ne.s32.totalorder %s976_s20, %s972_s19 }
  0x10   : > { %p34_p1 = scmp.eq.s32.totalorder %s33_s26, 0  ;;  %p44_p2 = scmp.eq.s32.totalorder %s980_s21, 0 }
  0x11   : > { %p49_p3 = scmp.ne.s32.totalorder %s972_s19, %s968_s18  ;;  %p1415_p4 = scmp.eq.s32.totalorder %s1045_s22, 0 }
  0x12   : > { %s1061_s27 = scalar_select %p34_p1, %s976_s20, %s36_s25  }
  0x13   : > { %p1063_p5 = por %p44_p2, %p43_p0  ;;  %p1069_p6 = por %p1415_p4, %p49_p3 }
  0x14   : > { %p141_p7 = scmp.eq.s32.totalorder %s1045_s22, 1  ;;  %p147_p8 = scmp.eq.s32.totalorder %s653_s23, 1 }
  0x15   : > { %s1421_s29 = scalar_select %p1069_p6, 1, 0 }
  0x16   : > { %p654_p9 = scmp.ge.s32.totalorder %s980_s21, 1  ;;  %p180_p10 = scmp.lt.s32.totalorder %s980_s21, 3 }
  0x17   : > { %p1076_p11 = por %p141_p7, %p43_p0  ;;  %p1080_p12 = por %p147_p8, %p49_p3 }
  0x18   : > { %p1084_p13 = pnand %p654_p9, %p180_p10  ;;  %s982_s8 = smov [#allocation7]  }
  0x19   : > { %s1422_s30 = scalar_select %p1076_p11, 1, 0 }
  0x1a   : > { %s1423_s6 = scalar_select %p1080_p12, 1, 0 }
  0x1b   : > { %p699_p2 = pneg %p1084_p13  ;;  %s193_s9 = sshll.u32 %s982_s8, 4  ;;  %s194_s9 = int_to_ptr.vmem [resolvable:$true] %s193_s9 }
  0x1c   : > { %p722_p4 = scmp.lt.s32.totalorder %s980_s21, 2  ;;  %p1425_p0 = scmp.eq.s32.totalorder %s1045_s22, 0 }
  0x1d   : > { %s983_s12 = smov [#allocation8]   ;;  %s777_s14 = scalar_lea.vmem %s194_s9, 128 }
  0x1e   : > { %p1094_p7 = pnand %p699_p2, %p1425_p0  ;;  %p1100_p3 = pnand %p722_p4, %p1063_p5 }
  0x1f   : > { %s204_s13 = sshll.u32 %s983_s12, 4  ;;  %p778_p9 = scmp.ne.s32.totalorder %s194_s9, %s777_s14  ;;  %s205_s13 = int_to_ptr.vmem [resolvable:$true] %s204_s13 }
  0x20   : > { %p768_p8 = pneg %p1094_p7  ;;  %p785_p0 = scmp.lt.s32.totalorder %s194_s9, %s194_s9 }
  0x21   : > { %p786_p1 = scmp.lt.s32.totalorder %s777_s14, %s777_s14 }
  0x22   : > { %p780_p10 = pnand %p778_p9, %p768_p8 }
  0x23   : > { %p787_p12 = por %p786_p1, %p785_p0 }
  0x24   : > { %p781_p2 = pneg %p780_p10 }
  0x26   : > { %p788_p11 = pnand %p787_p12, %p781_p2 }
  0x28   : > { %791 = shalt.err (!%p788_p11)
}
  0x29   : > { %s1428_s2 = sld [smem:[#allocation20_spill]]  ;;  %s215_s17 = sand.u32 1, %s976_s20  }
  0x2a   : > { %s803_s23 = scalar_lea.vmem %s205_s13, 128  ;;  %p811_p10 = scmp.lt.s32.totalorder %s205_s13, %s205_s13 }
  0x2b   : > { %p804_p4 = scmp.ne.s32.totalorder %s205_s13, %s803_s23  ;;  %p812_p6 = scmp.lt.s32.totalorder %s803_s23, %s803_s23 }
  0x2d   : > { %p806_p5 = pnand %p804_p4, %p768_p8  ;;  %p813_p1 = por %p812_p6, %p811_p10 }
  0x2f   : > { %702 = dma.hbm_to_vmem [thread:$0]  (!%p1094_p7), %s1428_s2, 128, %s194_s9, [#allocation6]  }
  0x30   : > { %p807_p9 = pneg %p806_p5 }
  0x32   : > { %p814_p12 = pnand %p813_p1, %p807_p9 }
  0x34   : > { %817 = shalt.err (!%p814_p12)
}
  0x35   : > { %705 = dma.hbm_to_vmem [thread:$0]  (!%p1094_p7), %s1412_s3, 128, %s205_s13, [#allocation9]  }
  0x36   : > { %s1123_s28 = sshll.u32 %s215_s17, 5  ;;  %s679_s8 = sshll.u32 %s980_s21, 9 }
  0x37   : > { %s1429_s0 = sld [smem:[#allocation19_spill]]  ;;  %s219_s10 = scalar_lea.vmem [#allocation2], %s1123_s28 }
  0x38   : > { %s226_s15 = sshll.u32 %s219_s10, 4  ;;  %s1136_s16 = scalar_lea.sflag [#allocation3], %s215_s17  ;;  %s1134_s15 = int_to_ptr.vmem [resolvable:$true] %s226_s15 }
  0x39   : > { %p820_p11 = pneg %p1100_p3 }
  0x3d   : > { %s1131_s14 = scalar_lea.hbm %s1429_s0, %s679_s8  ;;  %s823_s26 = scalar_lea.hbm %s1429_s0, 1024 }
  0x3e   : > { %s818_s13 = scalar_lea.hbm %s1131_s14, 512  ;;  %p824_p2 = scmp.lt.s32.totalorder %s1131_s14, %s1429_s0 }
  0x3f   : > { %p819_p6 = scmp.ne.s32.totalorder %s1131_s14, %s818_s13  ;;  %p825_p0 = scmp.lt.s32.totalorder %s823_s26, %s818_s13 }
  0x41   : > { %p821_p7 = pnand %p820_p11, %p819_p6  ;;  %p826_p4 = por %p825_p0, %p824_p2 }
  0x43   : > { %p822_p8 = pneg %p821_p7 }
  0x45   : > { %p827_p5 = pnand %p826_p4, %p822_p8 }
  0x47   : > { %830 = shalt.err (!%p827_p5)
}
  0x48   : > { %s831_s17 = scalar_lea.vmem %s1134_s15, 512  ;;  %s984_s10 = smov [#allocation2]  }
  0x49   : > { %p832_p9 = scmp.ne.s32.totalorder %s1134_s15, %s831_s17  ;;  %s836_s23 = sshll.u32 %s984_s10, 4  ;;  %s837_s23 = int_to_ptr.vmem [resolvable:$false] %s836_s23 }
  0x4a   : > { %s838_s25 = scalar_lea.vmem %s837_s23, 1024  ;;  %p839_p12 = scmp.lt.s32.totalorder %s1134_s15, %s837_s23 }
  0x4b   : > { %p834_p10 = pnand %p832_p9, %p820_p11  ;;  %p840_p6 = scmp.lt.s32.totalorder %s838_s25, %s831_s17 }
  0x4d   : > { %p835_p1 = pneg %p834_p10  ;;  %p841_p7 = por %p840_p6, %p839_p12 }
  0x4f   : > { %p842_p2 = pnand %p841_p7, %p835_p1 }
  0x51   : > { %845 = shalt.err (!%p842_p2)
}
  0x52   : > { %s985_s13 = smov 128   ;;  %s986_s26 = smov 8  }
  0x53   : > { %709 = dma.hbm_to_vmem [thread:$0]  (!%p1100_p3), %s1131_s14, 512, %s1134_s15, %s1136_s16, %s985_s13, %s985_s13, %s986_s26  }
  0x54   : > { %s1171_s17 = scalar_lea.hbm %s1410_s1, %s679_s8  ;;  %s240_s10 = scalar_lea.vmem [#allocation5], %s1123_s28 }
  0x55   : > { %s247_s23 = sshll.u32 %s240_s10, 4  ;;  %s236_s25 = sand.u32 1, %s980_s21   ;;  %s1174_s23 = int_to_ptr.vmem [resolvable:$true] %s247_s23 }
  0x56   : > { %s237_s0 = scalar_lea.sflag [#allocation6], %s236_s25  ;;  %s846_s2 = scalar_lea.hbm %s1171_s17, 512 }
  0x57   : > { %p847_p8 = scmp.ne.s32.totalorder %s1171_s17, %s846_s2  ;;  %s851_s8 = scalar_lea.hbm %s1410_s1, 1024 }
  0x58   : > { %p852_p5 = scmp.lt.s32.totalorder %s1171_s17, %s1410_s1  ;;  %p853_p9 = scmp.lt.s32.totalorder %s851_s8, %s846_s2 }
  0x59   : > { %p849_p0 = pnand %p847_p8, %p820_p11 }
  0x5a   : > { %p854_p10 = por %p853_p9, %p852_p5 }
  0x5b   : > { %p850_p4 = pneg %p849_p0 }
  0x5d   : > { %p855_p1 = pnand %p854_p10, %p850_p4 }
  0x5f   : > { %858 = shalt.err (!%p855_p1)
}
  0x60   : > { %s859_s28 = scalar_lea.vmem %s1174_s23, 512  ;;  %s987_s12 = smov [#allocation5]  }
  0x61   : > { %p860_p12 = scmp.ne.s32.totalorder %s1174_s23, %s859_s28  ;;  %s864_s10 = sshll.u32 %s987_s12, 4  ;;  %s865_s10 = int_to_ptr.vmem [resolvable:$false] %s864_s10 }
  0x62   : > { %s866_s25 = scalar_lea.vmem %s865_s10, 1024  ;;  %p867_p2 = scmp.lt.s32.totalorder %s1174_s23, %s865_s10 }
  0x63   : > { %p862_p6 = pnand %p860_p12, %p820_p11  ;;  %p868_p8 = scmp.lt.s32.totalorder %s866_s25, %s859_s28 }
  0x65   : > { %p863_p7 = pneg %p862_p6  ;;  %p869_p0 = por %p868_p8, %p867_p2 }
  0x67   : > { %p870_p5 = pnand %p869_p0, %p863_p7 }
  0x69   : > { %873 = shalt.err (!%p870_p5)
}
  0x6a   : > { %712 = dma.hbm_to_vmem [thread:$0]  (!%p1100_p3), %s1171_s17, 512, %s1174_s23, %s237_s0, %s985_s13, %s985_s13, %s986_s26  }
  0x6b   : > { %259 = sbr.rel (%p1084_p13) target bundleno = 405 (0x195), region = 36  ;;  %s1205_s2 = sand.u32 (!%p1084_p13), 1, %s972_s19  }
  0x6c   : > { %s1208_s14 = sshll.u32 (!%p1084_p13), %s1205_s2, 5  ;;  %s262_s15 = scalar_lea.sflag (!%p1084_p13), [#allocation3], %s1205_s2 }
  0x6d   : > { %s265_s11 = scalar_lea.vmem (!%p1084_p13), [#allocation2], %s1208_s14  ;;  %p1430_p11 = scmp.ne.s32.totalorder (!%p1084_p13), %s1421_s29, 0 }
  0x70   : > { %943 = dma.done.wait (%p1430_p11), %s262_s15, 512  }
  0x71   : > { %945 = vsyncadd (%p1430_p11), %s262_s15, 4294966784  ;;  %s270_s0 = sand.u32 1, %s1045_s22   ;;  %s1218_s13 = scalar_lea.vmem [#allocation5], %s1208_s14 }
  0x72   : > { %s271_s7 = scalar_lea.sflag [#allocation6], %s270_s0 }
  0x73   : > { %947 = dma.done.wait (%p1430_p11), %s271_s7, 512  }
  0x74   : > { %949 = vsyncadd (%p1430_p11), %s271_s7, 4294966784  ;;  %p1431_p13 = scmp.eq.s32.totalorder %s1045_s22, 0 }
  0x76   : > { %951 = dma.done.wait (%p1431_p13), [#allocation6], 128   ;;  %p1432_p3 = pmov %p1431_p13 }
  0x78   : > { %953 = vsyncadd (%p1432_p3), [#allocation6], 4294967168  ;;  %p1433_p4 = pmov %p1432_p3 }
  0x79   : > { %p1434_p9 = pmov %p1432_p3 }
  0x7a   : > { %955 = dma.done.wait (%p1433_p4), [#allocation9], 128  }
  0x7b   : > { %957 = vsyncadd (%p1434_p9), [#allocation9], 4294967168  ;;  %v324_v0 = vld [vmem:[#allocation8] sm:$0xff]  ;;  %s988_s26 = smov 16   ;;  %v1236_v3 = vld [vmem:[%s265_s11 + $0x18] sm:$0xff]  ;;  %s989_s29 = smov 112  }
  0x7c   : > { %v1232_v1 = vld [vmem:[%s265_s11 + $0x8] sm:$0xff]  ;;  %334 = vrot.lane.b32.xlu0 %v324_v0, %s988_s26  ;;  %v1238_v4 = vld [vmem:[#allocation7] sm:$0xff]  ;;  %v372_v6 = vmul.f32 %v1236_v3, %v324_v0  ;;  %v327_v9 = vld [vmem:[%s265_s11 + $0x10] sm:$0xff]  ;;  %vm393_vm0 = vcmask 130048   ;;  %vm398_vm1 = vcmask 261120   ;;  %s311_s17 = scalar_lea.vmem [#allocation10], %s1208_s14 }
  0x7d   : > { %v370_v2 = vmul.f32 %v1232_v1, %v324_v0  ;;  %v325_v5 = vld [vmem:[%s265_s11] sm:$0xff]  ;;  %v1243_v7 = vld [vmem:[%s1218_s13 + $0x8] sm:$0xff]  ;;  %v371_v11 = vmul.f32 %v327_v9, %v324_v0  ;;  %v1256_v19 = vld [vmem:[%s1218_s13 + $0x10] sm:$0xff]  ;;  %v331_v37 = vmul.f32 %v327_v9, %v1238_v4  ;;  %v330_v42 = vmul.f32 %v1232_v1, %v1238_v4  ;;  %s490_s23 = sshll.u32 %s311_s17, 4  ;;  %s681_s8 = sshll.u32 %s1045_s22, 9  ;;  %s1293_s23 = int_to_ptr.vmem [resolvable:$true] %s490_s23 }
  0x7e   : > { %v369_v8 = vmul.f32 %v325_v5, %v324_v0  ;;  %v440_v10 = vmul.f32 %v1243_v7, %v324_v0  ;;  %v403_v12 = vld [vmem:[%s1218_s13] sm:$0xff]  ;;  %v441_v22 = vmul.f32 %v1256_v19, %v324_v0  ;;  %v1263_v24 = vld [vmem:[%s1218_s13 + $0x18] sm:$0xff]  ;;  %v329_v36 = vmul.f32 %v325_v5, %v1238_v4  ;;  %s1297_s16 = scalar_lea.vmem [#allocation11], %s1208_s14  ;;  %s1312_s12 = scalar_lea.hbm %s1413_s4, %s681_s8 }
  0x7f   : > { %379 = vrot.lane.b32.xlu1 %v370_v2, %s988_s26  ;;  %v439_v13 = vmul.f32 %v403_v12, %v324_v0  ;;  %v442_v26 = vmul.f32 %v1263_v24, %v324_v0  ;;  %v407_v43 = vmul.f32 %v403_v12, %v1238_v4  ;;  %v332_v53 = vmul.f32 %v1236_v3, %v1238_v4  ;;  %s472_s10 = scalar_lea.sflag [#allocation4], %s1205_s2  ;;  %s874_s25 = scalar_lea.vmem %s1293_s23, 512 }
  0x80   : > { %362 = vrot.lane.b32.xlu0 %v1238_v4, %s988_s26  ;;  %v409_v62 = vmul.f32 %v1256_v19, %v1238_v4  ;;  %v408_v2 = vmul.f32 %v1243_v7, %v1238_v4  ;;  %p875_p10 = scmp.ne.s32.totalorder %s1293_s23, %s874_s25  ;;  %p1435_p1 = scmp.ne.s32.totalorder %s1422_s30, 0 }
  0x81   : > { %s990_s14 = smov [#allocation10]  }
  0x82   : > { %p876_p12 = pnand %p875_p10, %p1435_p1  ;;  %s878_s15 = sshll.u32 %s990_s14, 4  ;;  %s879_s15 = int_to_ptr.vmem [resolvable:$false] %s878_s15 }
  0x83   : > { %383 = vrot.lane.b32.xlu1 %v372_v6, %s988_s26  ;;  %s880_s11 = scalar_lea.vmem %s879_s15, 1024  ;;  %p881_p7 = scmp.lt.s32.totalorder %s1293_s23, %s879_s15 }
  0x84   : > { %377 = vrot.lane.b32.xlu0 %v369_v8, %s988_s26  ;;  %p877_p6 = pneg %p876_p12  ;;  %p882_p2 = scmp.lt.s32.totalorder %s880_s11, %s874_s25 }
  0x86   : > { %p883_p8 = por %p882_p2, %p881_p7 }
  0x87   : > { %449 = vrot.lane.b32.xlu1 %v440_v10, %s988_s26 }
  0x88   : > { %381 = vrot.lane.b32.xlu0 %v371_v11, %s988_s26  ;;  %p884_p0 = pnand %p883_p8, %p877_p6 }
  0x8c   : > { %447 = vrot.lane.b32.xlu0 %v439_v13, %s988_s26 }
  0xee   : > { %v335_v14 = vpop.permute.xlu0 %334 }
  0xef   : > { %v337_v15 = vmul.f32 %v335_v14, %v325_v5  ;;  %v339_v16 = vmul.f32 %v335_v14, %v327_v9  ;;  %v338_v17 = vmul.f32 %v335_v14, %v1232_v1  ;;  %v411_v18 = vmul.f32 %v403_v12, %v335_v14 }
  0xf0   : > { %v340_v20 = vmul.f32 %v335_v14, %v1236_v3  ;;  %v413_v21 = vmul.f32 %v1256_v19, %v335_v14  ;;  %v412_v23 = vmul.f32 %v1243_v7, %v335_v14  ;;  %v414_v25 = vmul.f32 %v1263_v24, %v335_v14 }
  0xf1   : > { %345 = vrot.lane.b32.xlu1 %v337_v15, %s989_s29  ;;  %349 = vrot.lane.b32.xlu0 %v339_v16, %s989_s29  ;;  %v380_v28 = vpop.permute.xlu1 %379 }
  0xf2   : > { %v1269_v27 = vpop.permute.xlu0 %362 }
  0xf3   : > { %v365_v34 = vmul.f32 %v1269_v27, %v325_v5  ;;  %v367_v35 = vmul.f32 %v1269_v27, %v327_v9  ;;  %v366_v38 = vmul.f32 %v1269_v27, %v1232_v1  ;;  %v435_v39 = vmul.f32 %v403_v12, %v1269_v27 }
  0xf4   : > { %v368_v50 = vmul.f32 %v1269_v27, %v1236_v3  ;;  %v436_v0 = vmul.f32 %v1243_v7, %v1269_v27  ;;  %v437_v5 = vmul.f32 %v1256_v19, %v1269_v27 }
  0xf5   : > { %347 = vrot.lane.b32.xlu1 %v338_v17, %s989_s29  ;;  %419 = vrot.lane.b32.xlu0 %v411_v18, %s989_s29  ;;  %v384_v30 = vpop.permute.xlu1 %383  ;;  %v390_v54 = vadd.f32 %v380_v28, %v366_v38 }
  0xf6   : > { %v378_v29 = vpop.permute.xlu0 %377  ;;  %v392_v63 = vadd.f32 %v384_v30, %v368_v50 }
  0xf7   : > { %v389_v44 = vadd.f32 %v378_v29, %v365_v34 }
  0xf9   : > { %351 = vrot.lane.b32.xlu1 %v340_v20, %s989_s29  ;;  %423 = vrot.lane.b32.xlu0 %v413_v21, %s989_s29  ;;  %v450_v32 = vpop.permute.xlu1 %449 }
  0xfa   : > { %v382_v31 = vpop.permute.xlu0 %381  ;;  %v460_v9 = vadd.f32 %v450_v32, %v436_v0 }
  0xfb   : > { %v391_v45 = vadd.f32 %v382_v31, %v367_v35 }
  0xfd   : > { %421 = vrot.lane.b32.xlu1 %v412_v23, %s989_s29  ;;  %451 = vrot.lane.b32.xlu0 %v441_v22, %s988_s26 }
  0xfe   : > { %v448_v33 = vpop.permute.xlu0 %447 }
  0xff   : > { %v459_v55 = vadd.f32 %v448_v33, %v435_v39 }
 0x101   : > { %425 = vrot.lane.b32.xlu1 %v414_v25, %s989_s29 }
 0x105   : > { %453 = vrot.lane.b32.xlu1 %v442_v26, %s988_s26 }
 0x163   : > { %v346_v40 = vpop.permute.xlu1 %345  ;;  %v350_v41 = vpop.permute.xlu0 %349 }
 0x164   : > { %v357_v46 = vsub.f32 %v329_v36, %v346_v40  ;;  %v359_v47 = vsub.f32 %v331_v37, %v350_v41 }
 0x166   : > { %v394_v48 = vsel %vm393_vm0, %v357_v46, %v389_v44  ;;  %v396_v49 = vsel %vm393_vm0, %v359_v47, %v391_v45 }
 0x167   : > { %399 = vst.msk [vmem:[%s311_s17] sm:$0xff] %vm398_vm1, %v394_v48  ;;  %401 = vst.msk [vmem:[%s311_s17 + $0x10] sm:$0xff] %vm398_vm1, %v396_v49  ;;  %v348_v51 = vpop.permute.xlu1 %347  ;;  %v420_v52 = vpop.permute.xlu0 %419 }
 0x168   : > { %v358_v56 = vsub.f32 %v330_v42, %v348_v51  ;;  %v431_v57 = vsub.f32 %v407_v43, %v420_v52 }
 0x16a   : > { %v395_v58 = vsel %vm393_vm0, %v358_v56, %v390_v54  ;;  %v463_v59 = vsel %vm393_vm0, %v431_v57, %v459_v55 }
 0x16b   : > { %400 = vst.msk [vmem:[%s311_s17 + $0x8] sm:$0xff] %vm398_vm1, %v395_v58  ;;  %467 = vst.msk [vmem:[%s1297_s16] sm:$0xff] %vm398_vm1, %v463_v59  ;;  %v352_v60 = vpop.permute.xlu1 %351  ;;  %v424_v61 = vpop.permute.xlu0 %423 }
 0x16c   : > { %v360_v1 = vsub.f32 %v332_v53, %v352_v60  ;;  %v433_v10 = vsub.f32 %v409_v62, %v424_v61 }
 0x16e   : > { %v397_v3 = vsel %vm393_vm0, %v360_v1, %v392_v63 }
 0x16f   : > { %402 = vst.msk [vmem:[%s311_s17 + $0x18] sm:$0xff] %vm398_vm1, %v397_v3  ;;  %v422_v6 = vpop.permute.xlu1 %421  ;;  %v452_v8 = vpop.permute.xlu0 %451 }
 0x170   : > { %v432_v11 = vsub.f32 %v408_v2, %v422_v6  ;;  %v461_v7 = vadd.f32 %v452_v8, %v437_v5 }
 0x171   : > { %887 = shalt.err (!%p884_p0)
}
 0x172   : > { %s888_s0 = scalar_lea.hbm %s1312_s12, 512  ;;  %s892_s26 = scalar_lea.hbm %s1413_s4, 1024 }
 0x173   : > { %p889_p5 = scmp.ne.s32.totalorder %s1312_s12, %s888_s0  ;;  %p893_p3 = scmp.lt.s32.totalorder %s1312_s12, %s1413_s4 }
 0x174   : > { %p894_p4 = scmp.lt.s32.totalorder %s892_s26, %s888_s0 }
 0x175   : > { %p890_p11 = pnand %p889_p5, %p1435_p1 }
 0x176   : > { %p895_p9 = por %p894_p4, %p893_p3 }
 0x177   : > { %p891_p13 = pneg %p890_p11 }
 0x179   : > { %p896_p10 = pnand %p895_p9, %p891_p13 }
 0x17b   : > { %899 = shalt.err (!%p896_p10)
}
 0x17c   : > { %s991_s9 = smov 128   ;;  %s992_s28 = smov 8   ;;  %v464_v12 = vsel %vm393_vm0, %v432_v11, %v460_v9  ;;  %v465_v13 = vsel %vm393_vm0, %v433_v10, %v461_v7  ;;  %v426_v14 = vpop.permute.xlu1 %425  ;;  %v410_v15 = vmul.f32 %v1263_v24, %v1238_v4  ;;  %v438_v16 = vmul.f32 %v1263_v24, %v1269_v27 }
 0x17d   : > { %695 = dma.vmem_to_hbm [thread:$0]  (%p1435_p1), %s1293_s23, 512, %s1312_s12, %s472_s10, %s991_s9, %s991_s9, %s992_s28  }
 0x17e   : > { %468 = vst.msk [vmem:[%s1297_s16 + $0x8] sm:$0xff] %vm398_vm1, %v464_v12  ;;  %469 = vst.msk [vmem:[%s1297_s16 + $0x10] sm:$0xff] %vm398_vm1, %v465_v13  ;;  %s506_s25 = sshll.u32 %s1297_s16, 4  ;;  %v434_v18 = vsub.f32 %v410_v15, %v426_v14  ;;  %s1362_s10 = scalar_lea.hbm %s1414_s5, %s681_s8  ;;  %s1355_s25 = int_to_ptr.vmem [resolvable:$true] %s506_s25 }
 0x17f   : > { %s477_s14 = scalar_lea.sflag [#allocation12], %s1205_s2  ;;  %s900_s15 = scalar_lea.vmem %s1355_s25, 512 }
 0x180   : > { %v454_v17 = vpop.permute.xlu1 %453  ;;  %p901_p12 = scmp.ne.s32.totalorder %s1355_s25, %s900_s15  ;;  %s993_s11 = smov [#allocation11]  }
 0x181   : > { %v462_v19 = vadd.f32 %v454_v17, %v438_v16  ;;  %s904_s0 = sshll.u32 %s993_s11, 4  ;;  %s905_s0 = int_to_ptr.vmem [resolvable:$false] %s904_s0 }
 0x182   : > { %p902_p6 = pnand %p901_p12, %p1435_p1  ;;  %s906_s7 = scalar_lea.vmem %s905_s0, 1024 }
 0x183   : > { %v466_v4 = vsel %vm393_vm0, %v434_v18, %v462_v19  ;;  %p907_p2 = scmp.lt.s32.totalorder %s1355_s25, %s905_s0  ;;  %p908_p8 = scmp.lt.s32.totalorder %s906_s7, %s900_s15 }
 0x184   : > { %470 = vst.msk [vmem:[%s1297_s16 + $0x18] sm:$0xff] %vm398_vm1, %v466_v4  ;;  %p903_p7 = pneg %p902_p6 }
 0x185   : > { %p909_p0 = por %p908_p8, %p907_p2 }
 0x187   : > { %p910_p5 = pnand %p909_p0, %p903_p7 }
 0x189   : > { %913 = shalt.err (!%p910_p5)
}
 0x18a   : > { %s914_s22 = scalar_lea.hbm %s1362_s10, 512  ;;  %s918_s16 = scalar_lea.hbm %s1414_s5, 1024 }
 0x18b   : > { %p915_p11 = scmp.ne.s32.totalorder %s1362_s10, %s914_s22  ;;  %p919_p4 = scmp.lt.s32.totalorder %s1362_s10, %s1414_s5 }
 0x18c   : > { %p920_p9 = scmp.lt.s32.totalorder %s918_s16, %s914_s22 }
 0x18d   : > { %p916_p13 = pnand %p915_p11, %p1435_p1 }
 0x18e   : > { %p921_p10 = por %p920_p9, %p919_p4 }
 0x18f   : > { %p917_p3 = pneg %p916_p13 }
 0x191   : > { %p922_p12 = pnand %p921_p10, %p917_p3 }
 0x193   : > { %925 = shalt.err (!%p922_p12)
}
 0x194   : > { %696 = dma.vmem_to_hbm [thread:$0]  (%p1435_p1), %s1355_s25, 512, %s1362_s10, %s477_s14, %s991_s9, %s991_s9, %s992_s28  }
 0x195 PF: > { %s521_s29 = sand.u32 1, %s968_s18   ;;  %p1436_p6 = scmp.ne.s32.totalorder %s1423_s6, 0 }
 0x196   : > { %p1437_p7 = scmp.ge.s32.totalorder %s980_s21, 2  ;;  %s522_s17 = scalar_lea.sflag [#allocation4], %s521_s29 }
 0x198   : > { %p714_p2 = pnand %p1437_p7, %p1436_p6 }
 0x19a   : > { %p715_p8 = pneg %p714_p2 }
 0x19c   : > { %959 = dma.done.wait (%p715_p8), %s522_s17, 512  }
 0x19d   : > { %961 = vsyncadd (%p715_p8), %s522_s17, 4294966784  ;;  %s531_s23 = scalar_lea.sflag [#allocation12], %s521_s29 }
 0x19e   : > { %963 = dma.done.wait (%p715_p8), %s531_s23, 512  }
 0x19f   : > { %965 = vsyncadd (%p715_p8), %s531_s23, 4294966784  ;;  %p26_p1 = scmp.ge.s32.totalorder %s1049_s24, 4   ;;  %s1438_s18 = smov %s972_s19 }
 0x1a0   : > { %s1439_s19 = smov %s976_s20  ;;  %s1440_s20 = smov %s1061_s27 }
 0x1a1   : > { %s1441_s21 = smov %s1049_s24  ;;  %28 = sbr.rel (!%p26_p1) target bundleno = 13 (0xd), region = 119 }
 0x1a6   :  { %536 = vsyncpa [#allocation3], 1 }
 0x1a7   :  { %538 = vsyncpa [#allocation3 + $0x1], 1 }
 0x1a8   :  { %539 = vsyncpa [#allocation6], 1 }
 0x1a9   :  { %541 = vsyncpa [#allocation6 + $0x1], 1 }
 0x1aa   :  { %542 = vsyncpa [#allocation9], 1 }
 0x1ab   :  { %543 = vsyncpa [#allocation4], 1 }
 0x1ac   :  { %545 = vsyncpa [#allocation4 + $0x1], 1 }
 0x1ad   :  { %546 = vsyncpa [#allocation12], 1 }
 0x1ae   :  { %548 = vsyncpa [#allocation12 + $0x1], 1 }

</bundles_post_ra>
